<compile_context>
chip_gen: v7x
topology: tpu7x:2x2x1
jax: 0.10.0
libtpu: 0.0.40
codegen_flags: <defaults>
</compile_context>

<pallas_src>
import functools

import jax
import jax.numpy as jnp
from jax import lax
from jax.experimental import pallas as pl
from jax.experimental.pallas import tpu as pltpu


DEFAULT_TILE_B = 4096     # rows per grid step; 2-8K amortizes the ~0.35us/step overhead
_SPLIT_THRESHOLD = 2048   # force >=2 grid steps at/above this batch (v7x dual TC)


def _trust_mlp_kernel(x_ref, w1_ref, b1_ref, w2_ref, b2_ref, w3_ref, b3_ref, o_ref):
    """One batch tile: 2 bf16 MXU matmuls + f32 ReLU, NT head, stable sigmoid."""
    # x arrives in its original f32; cast to bf16 here on the VPU (hidden under
    # the tile DMA) instead of materializing a bf16 copy of x in HBM.
    x = x_ref[...].astype(jnp.bfloat16)                                # (TB, IN)

    # Layers 1/2: bf16 MXU operands, f32 accumulation, bias + ReLU in f32.
    h1 = jnp.dot(x, w1_ref[...], preferred_element_type=jnp.float32) + b1_ref[...]
    h1 = jnp.maximum(h1, 0.0)
    h2 = jnp.dot(h1.astype(jnp.bfloat16), w2_ref[...],
                 preferred_element_type=jnp.float32) + b2_ref[...]
    h2 = jnp.maximum(h2, 0.0)                                          # (TB, H2) f32

    # Output head, produced lane-dense: contract w3 (1, H2) against h2 (TB, H2)
    # along the feature axis with an NT dot_general (same dimension_numbers as
    # flash-attention's q @ k^T), so the per-row logits land as a (1, TB) lane
    # vector.  Stores stay unmasked and the epilogue touches ~128x fewer vregs
    # than a (TB, 1) lane-width-1 layout would.
    logits = lax.dot_general(w3_ref[...], h2, (((1,), (1,)), ((), ())),
                             preferred_element_type=jnp.float32)
    logits = logits + b3_ref[...]                                      # (1, TB)

    # Numerically stable sigmoid with exact division: no exp overflow for
    # large |logit| and no approximate-reciprocal drift above 1.0.
    ez = jnp.exp(-jnp.abs(logits))
    sig = jnp.where(logits >= 0.0, 1.0, ez) / (1.0 + ez)
    o_ref[...] = sig.reshape(o_ref.shape)


def _round_up(n, m):
    return -(-n // m) * m


def _choose_tiling(batch, tile_b):
    """Pick (num_tiles, tb): full-batch tile when small, >=2 tiles when big."""
    num_tiles = max(1, -(-batch // tile_b))
    if num_tiles == 1 and batch >= _SPLIT_THRESHOLD:
        num_tiles = 2                       # keep both v7x TensorCores busy
    if num_tiles == 1:
        return 1, batch                     # block dims == full array dims
    tb = _round_up(-(-batch // num_tiles), 128)   # lane-dense output rows
    return -(-batch // tb), tb              # last block may be partial (clipped DMA)


@functools.partial(jax.jit, static_argnames=("tile_b",))
def trust_network_forward(x, params, *, tile_b=DEFAULT_TILE_B):
    """TrustNetwork forward pass via a single gridded pallas_call.

    Args:
      x: (batch, input_size) float array.
      params: dict with w1 (in,h1), b1 (1,h1), w2 (h1,h2), b2 (1,h2),
              w3 (h2,1), b3 (1,1) -- same math as the PyTorch module.
    Returns:
      (batch, 1) float32 trust scores in (0, 1).
    """
    batch, in_size = x.shape
    h1 = params["w1"].shape[1]
    h2 = params["w2"].shape[1]

    # Weights/biases are tiny and stay VMEM-resident (constant index_map);
    # only the MXU operands are cast to bf16.
    w1 = params["w1"].astype(jnp.bfloat16)
    w2 = params["w2"].astype(jnp.bfloat16)
    b1 = params["b1"].reshape(1, h1).astype(jnp.float32)
    b2 = params["b2"].reshape(1, h2).astype(jnp.float32)
    w3 = params["w3"].reshape(1, h2).astype(jnp.float32)   # head row for the NT dot
    b3 = params["b3"].reshape(1, 1).astype(jnp.float32)

    num_tiles, tb = _choose_tiling(batch, tile_b)
    const = lambda i: (0, 0)

    out = pl.pallas_call(
        _trust_mlp_kernel,
        out_shape=jax.ShapeDtypeStruct((num_tiles, 1, tb), jnp.float32),
        grid=(num_tiles,),
        in_specs=[
            pl.BlockSpec((tb, in_size), lambda i: (i, 0)),   # x: streamed, double-buffered
            pl.BlockSpec((in_size, h1), const),              # w1 (bf16, resident)
            pl.BlockSpec((1, h1), const),                    # b1
            pl.BlockSpec((h1, h2), const),                   # w2 (bf16, resident)
            pl.BlockSpec((1, h2), const),                    # b2
            pl.BlockSpec((1, h2), const),                    # w3 row
            pl.BlockSpec((1, 1), const),                     # b3
        ],
        out_specs=pl.BlockSpec((1, 1, tb), lambda i: (i, 0, 0)),   # lane-dense row per step
        compiler_params=pltpu.CompilerParams(
            dimension_semantics=("parallel",),     # shard batch tiles across v7x TCs
            vmem_limit_bytes=32 * 1024 * 1024,     # comfortable on v5e/v6e/v7x
        ),
    )(x, w1, b1, w2, b2, w3, b3)

    # Tile-major, lane-ordered result == batch order; drop clipped tail rows.
    return out.reshape(-1)[:batch].reshape(batch, 1)


def init_params(key, input_size, hidden_layers=(64, 32)):
    """Deterministic init mimicking nn.Linear default (uniform +/- 1/sqrt(fan_in))."""
    sizes = [input_size] + list(hidden_layers) + [1]
    params = {}
    for i, (fan_in, fan_out) in enumerate(zip(sizes[:-1], sizes[1:]), start=1):
        key, kw, kb = jax.random.split(key, 3)
        bound = 1.0 / (fan_in ** 0.5)
        params[f"w{i}"] = jax.random.uniform(
            kw, (fan_in, fan_out), jnp.float32, -bound, bound)
        params[f"b{i}"] = jax.random.uniform(
            kb, (1, fan_out), jnp.float32, -bound, bound)
    return params


def _reference(x, params):
    r = jnp.maximum(x @ params["w1"] + params["b1"], 0.0)
    r = jnp.maximum(r @ params["w2"] + params["b2"], 0.0)
    return jax.nn.sigmoid(r @ params["w3"] + params["b3"])


if __name__ == "__main__":
    key = jax.random.PRNGKey(0)
    input_size = 16
    k_x, k_x2, k_p = jax.random.split(key, 3)
    params = init_params(k_p, input_size, hidden_layers=(64, 32))

    # Small, single-tile case (batch=8).
    batch = 8
    x = jax.random.normal(k_x, (batch, input_size), dtype=jnp.float32)
    out = jax.block_until_ready(trust_network_forward(x, params))
    assert out.shape == (batch, 1), out.shape
    assert bool(jnp.all((out > 0.0) & (out < 1.0)))
    ref = _reference(x, params)
    err = float(jnp.max(jnp.abs(out - ref)))
    assert bool(jnp.allclose(out, ref, atol=3e-2, rtol=3e-2)), err

    # Multi-tile ragged case (exercises the gridded path + clipped last block).
    batch2 = 2500
    x2 = jax.random.normal(k_x2, (batch2, input_size), dtype=jnp.float32)
    out2 = jax.block_until_ready(trust_network_forward(x2, params, tile_b=1024))
    ref2 = _reference(x2, params)
    err2 = float(jnp.max(jnp.abs(out2 - ref2)))
    assert out2.shape == (batch2, 1), out2.shape
    assert bool(jnp.allclose(out2, ref2, atol=3e-2, rtol=3e-2)), err2

    print("KERNEL_OK")
</pallas_src>

<mosaic_0001>
module attributes {stable_mosaic.version = 11 : i64} {
  func.func @_trust_mlp_kernel(%arg0: i32, %arg1: memref<8x16xf32, #tpu.memory_space<vmem>>, %arg2: memref<16x64xbf16, #tpu.memory_space<vmem>>, %arg3: memref<1x64xf32, #tpu.memory_space<vmem>>, %arg4: memref<64x32xbf16, #tpu.memory_space<vmem>>, %arg5: memref<1x32xf32, #tpu.memory_space<vmem>>, %arg6: memref<1x32xf32, #tpu.memory_space<vmem>>, %arg7: memref<1x1xf32, #tpu.memory_space<vmem>>, %arg8: memref<1x1x8xf32, #tpu.memory_space<vmem>>) attributes {dimension_semantics = [#tpu.dimension_semantics<parallel>], iteration_bounds = array<i64: 1>, scalar_prefetch = 0 : i64, scratch_operands = 0 : i64, tpu.core_type = #tpu.core_type<tc>, window_params = [{transform_indices = @transform_0, window_bounds = array<i64: 8, 16>}, {pipeline_mode = #tpu.pipeline_mode<synchronous>, transform_indices = @transform_1, window_bounds = array<i64: 16, 64>}, {pipeline_mode = #tpu.pipeline_mode<synchronous>, transform_indices = @transform_2, window_bounds = array<i64: 1, 64>}, {pipeline_mode = #tpu.pipeline_mode<synchronous>, transform_indices = @transform_3, window_bounds = array<i64: 64, 32>}, {pipeline_mode = #tpu.pipeline_mode<synchronous>, transform_indices = @transform_4, window_bounds = array<i64: 1, 32>}, {pipeline_mode = #tpu.pipeline_mode<synchronous>, transform_indices = @transform_5, window_bounds = array<i64: 1, 32>}, {pipeline_mode = #tpu.pipeline_mode<synchronous>, transform_indices = @transform_6, window_bounds = array<i64: 1, 1>}, {transform_indices = @transform_7, window_bounds = array<i64: 1, 1, 8>}]} {
    %c0 = arith.constant 0 : index
    %c0_0 = arith.constant 0 : index
    %0 = vector.load %arg1[%c0, %c0_0] : memref<8x16xf32, #tpu.memory_space<vmem>>, vector<8x16xf32>
    %1 = arith.truncf %0 : vector<8x16xf32> to vector<8x16xbf16>
    %c0_1 = arith.constant 0 : index
    %c0_2 = arith.constant 0 : index
    %2 = vector.load %arg2[%c0_1, %c0_2] : memref<16x64xbf16, #tpu.memory_space<vmem>>, vector<16x64xbf16>
    %cst = arith.constant dense<0.000000e+00> : vector<8x64xf32>
    %3 = tpu.matmul %1, %2, %cst {dimension_numbers = #tpu.dot_dimension_numbers<[1], [0], [0], [1], [0, 0, 1, 1], [], []>} : vector<8x16xbf16>, vector<16x64xbf16>, vector<8x64xf32> -> vector<8x64xf32>
    %c0_3 = arith.constant 0 : index
    %c0_4 = arith.constant 0 : index
    %4 = vector.load %arg3[%c0_3, %c0_4] : memref<1x64xf32, #tpu.memory_space<vmem>>, vector<1x64xf32>
    %5 = vector.broadcast %4 : vector<1x64xf32> to vector<8x64xf32>
    %6 = arith.addf %3, %5 : vector<8x64xf32>
    %cst_5 = arith.constant 0.000000e+00 : f32
    %7 = vector.broadcast %cst_5 : f32 to vector<8x64xf32>
    %8 = arith.maximumf %6, %7 : vector<8x64xf32>
    %9 = arith.truncf %8 : vector<8x64xf32> to vector<8x64xbf16>
    %c0_6 = arith.constant 0 : index
    %c0_7 = arith.constant 0 : index
    %10 = vector.load %arg4[%c0_6, %c0_7] : memref<64x32xbf16, #tpu.memory_space<vmem>>, vector<64x32xbf16>
    %cst_8 = arith.constant dense<0.000000e+00> : vector<8x32xf32>
    %11 = tpu.matmul %9, %10, %cst_8 {dimension_numbers = #tpu.dot_dimension_numbers<[1], [0], [0], [1], [0, 0, 1, 1], [], []>} : vector<8x64xbf16>, vector<64x32xbf16>, vector<8x32xf32> -> vector<8x32xf32>
    %c0_9 = arith.constant 0 : index
    %c0_10 = arith.constant 0 : index
    %12 = vector.load %arg5[%c0_9, %c0_10] : memref<1x32xf32, #tpu.memory_space<vmem>>, vector<1x32xf32>
    %13 = vector.broadcast %12 : vector<1x32xf32> to vector<8x32xf32>
    %14 = arith.addf %11, %13 : vector<8x32xf32>
    %cst_11 = arith.constant 0.000000e+00 : f32
    %15 = vector.broadcast %cst_11 : f32 to vector<8x32xf32>
    %16 = arith.maximumf %14, %15 : vector<8x32xf32>
    %c0_12 = arith.constant 0 : index
    %c0_13 = arith.constant 0 : index
    %17 = vector.load %arg6[%c0_12, %c0_13] : memref<1x32xf32, #tpu.memory_space<vmem>>, vector<1x32xf32>
    %cst_14 = arith.constant dense<0.000000e+00> : vector<1x8xf32>
    %18 = tpu.matmul %17, %16, %cst_14 {dimension_numbers = #tpu.dot_dimension_numbers<[1], [1], [0], [0], [0, 0, 1, 0], [], []>} : vector<1x32xf32>, vector<8x32xf32>, vector<1x8xf32> -> vector<1x8xf32>
    %c0_15 = arith.constant 0 : index
    %c0_16 = arith.constant 0 : index
    %19 = vector.load %arg7[%c0_15, %c0_16] : memref<1x1xf32, #tpu.memory_space<vmem>>, vector<1x1xf32>
    %20 = vector.broadcast %19 : vector<1x1xf32> to vector<1x8xf32>
    %21 = arith.addf %18, %20 : vector<1x8xf32>
    %22 = math.absf %21 : vector<1x8xf32>
    %cst_17 = arith.constant 0.000000e+00 : f32
    %23 = vector.broadcast %cst_17 : f32 to vector<1x8xf32>
    %24 = arith.subf %23, %22 : vector<1x8xf32>
    %25 = math.exp %24 : vector<1x8xf32>
    %cst_18 = arith.constant 0.000000e+00 : f32
    %26 = vector.broadcast %cst_18 : f32 to vector<1x8xf32>
    %27 = arith.cmpf oge, %21, %26 : vector<1x8xf32>
    %cst_19 = arith.constant 1.000000e+00 : f32
    %28 = vector.broadcast %cst_19 : f32 to vector<1x8xf32>
    %29 = arith.select %27, %28, %25 : vector<1x8xi1>, vector<1x8xf32>
    %cst_20 = arith.constant 1.000000e+00 : f32
    %30 = vector.broadcast %cst_20 : f32 to vector<1x8xf32>
    %31 = arith.addf %30, %25 : vector<1x8xf32>
    %32 = arith.divf %29, %31 : vector<1x8xf32>
    %33 = vector.shape_cast %32 : vector<1x8xf32> to vector<1x1x8xf32>
    %c0_21 = arith.constant 0 : index
    %c0_22 = arith.constant 0 : index
    %c0_23 = arith.constant 0 : index
    %34 = vector.load %arg8[%c0_21, %c0_22, %c0_23] : memref<1x1x8xf32, #tpu.memory_space<vmem>>, vector<1x1x8xf32>
    tpu.vector_store %arg8[%c0_21, %c0_22, %c0_23], %33 {strides = array<i32>} : memref<1x1x8xf32, #tpu.memory_space<vmem>>, vector<1x1x8xf32>,
    return
  }
  func.func @transform_0(%arg0: i32) -> (i32, i32) {
    %c0_i32 = arith.constant 0 : i32
    %c0_i32_0 = arith.constant 0 : i32
    return %arg0, %c0_i32 : i32, i32
  }
  func.func @transform_1(%arg0: i32) -> (i32, i32) {
    %c0_i32 = arith.constant 0 : i32
    %c0_i32_0 = arith.constant 0 : i32
    %c0_i32_1 = arith.constant 0 : i32
    return %c0_i32, %c0_i32_0 : i32, i32
  }
  func.func @transform_2(%arg0: i32) -> (i32, i32) {
    %c0_i32 = arith.constant 0 : i32
    %c0_i32_0 = arith.constant 0 : i32
    %c0_i32_1 = arith.constant 0 : i32
    return %c0_i32, %c0_i32_0 : i32, i32
  }
  func.func @transform_3(%arg0: i32) -> (i32, i32) {
    %c0_i32 = arith.constant 0 : i32
    %c0_i32_0 = arith.constant 0 : i32
    %c0_i32_1 = arith.constant 0 : i32
    return %c0_i32, %c0_i32_0 : i32, i32
  }
  func.func @transform_4(%arg0: i32) -> (i32, i32) {
    %c0_i32 = arith.constant 0 : i32
    %c0_i32_0 = arith.constant 0 : i32
    %c0_i32_1 = arith.constant 0 : i32
    return %c0_i32, %c0_i32_0 : i32, i32
  }
  func.func @transform_5(%arg0: i32) -> (i32, i32) {
    %c0_i32 = arith.constant 0 : i32
    %c0_i32_0 = arith.constant 0 : i32
    %c0_i32_1 = arith.constant 0 : i32
    return %c0_i32, %c0_i32_0 : i32, i32
  }
  func.func @transform_6(%arg0: i32) -> (i32, i32) {
    %c0_i32 = arith.constant 0 : i32
    %c0_i32_0 = arith.constant 0 : i32
    %c0_i32_1 = arith.constant 0 : i32
    return %c0_i32, %c0_i32_0 : i32, i32
  }
  func.func @transform_7(%arg0: i32) -> (i32, i32, i32) {
    %c0_i32 = arith.constant 0 : i32
    %c0_i32_0 = arith.constant 0 : i32
    %c0_i32_1 = arith.constant 0 : i32
    return %arg0, %c0_i32, %c0_i32_0 : i32, i32, i32
  }
}

</mosaic_0001>

<bundles_post_ra>
// kernel: trust_network_forward.1
= control target key start
LH: loop header
LB: loop body
LE: loop exit
PB: predicated region body
PF: predicated region fallthrough
CT: control target
= control target key end

     0   :  { %s457_s0 = inlined_call_operand.vmem [shape: f32[8,16], index: 0, kind: input, shape index: {}]   ;;  %s458_s1 = inlined_call_operand.vmem [shape: bf16[16,64], index: 1, kind: input, shape index: {}]   ;;  %s459_s2 = inlined_call_operand.vmem [shape: f32[1,64], index: 2, kind: input, shape index: {}]   ;;  %s460_s3 = inlined_call_operand.vmem [shape: bf16[64,32], index: 3, kind: input, shape index: {}]   ;;  %s461_s4 = inlined_call_operand.vmem [shape: f32[1,32], index: 4, kind: input, shape index: {}]   ;;  %s462_s5 = inlined_call_operand.vmem [shape: f32[1,32], index: 5, kind: input, shape index: {}]   ;;  %s463_s6 = inlined_call_operand.<no memory space> [shape: f32[1,1], index: 6, kind: input, shape index: {}]   ;;  %s464_s7 = inlined_call_operand.hbm [shape: f32[1,1,8], index: 7, kind: output, shape index: {}]  }
   0x1   :  { %v12_v0 = vstv %s463_s6 }
   0x2   :  { %13 = vst [vmem:[#allocation2] sm:$0x1] %v12_v0 }
   0x3   :  { %v338_v1 = vld [vmem:[%s458_s1] sm:$0xff]   ;;  %v371_v2 = vmov 0.0   ;;  %vm47_vm0 = vcmask 130048   ;;  %vm372_vm1 = vmmov 0   ;;  %v340_v6 = vld [vmem:[%s460_s3 + $0x8] sm:$0xff]  }
   0x4   :  { %310 = vmatprep.subr.bf16.mxu0 %v371_v2  ;;  %v30_v3 = vld [vmem:[%s457_s0] sm:$0xff]  ;;  %316 = vmatprep.subr.bf16.mxu1 %v371_v2 }
   0x5   :  { %v339_v4 = vld [vmem:[%s460_s3] sm:$0xff]   ;;  %311 = vmatpush3.bf16.msra.mxu0 %v338_v1  ;;  %312 = vmatprep.mubr.msk.bf16.mxu0 %vm372_vm1, %v371_v2  ;;  %v31_v5 = vpack.c.bf16 %v30_v3, %v30_v3 }
   0x6   :  { %317 = vmatpush3.bf16.msra.mxu1 %v339_v4  ;;  %324 = vmatprep.mubr.msk.bf16.mxu1 %vm372_vm1, %v371_v2 }
   0x7   :  { %318 = vmatprep.subr.bf16.mxu1 %v371_v2  ;;  %328 = vmatprep.subr.mxu0 %v371_v2 }
   0x8   :  { %313 = vmatmul.mubr.msk.bf16.vlgmr.msra.gmra.mrb[0].mxu0 %vm47_vm0, %v31_v5 }
   0x9   :  { %14 = vsyncpa [#allocation4], 0  ;;  %330 = vmatprep.mubr.msk.f32.mxu0 %vm372_vm1, %v371_v2  ;;  %v341_v7 = vld [vmem:[%s460_s3 + $0x10] sm:$0xff]   ;;  %v342_v8 = vld [vmem:[%s460_s3 + $0x18] sm:$0xff]   ;;  %vm132_vm2 = vcmask 523264   ;;  %v373_v18 = vmov 0   ;;  %v184_v27 = vlaneseq }
   0xa   :  { %319 = vmatpush3.bf16.msra.mxu1 %v340_v6  ;;  %v290_v9 = vld [vmem:[%s459_s2] ss:$0 sm:$0xff]  ;;  %337 = vset.pattern.permute.xlu0 %v373_v18  ;;  %vm188_vm3 = vcmask 261120   ;;  %vm274_vm5 = vcmask 57344  }
   0xb   :  { %320 = vmatprep.subr.bf16.mxu1 %v371_v2  ;;  %v178_v17 = vld [vmem:[#allocation2] sm:$0x1]  ;;  %v185_v28 = vshrl.u32 %v184_v27, 7 }
   0xc   :  { %181 = vperm.xlu0 %337, %v178_v17   ;;  %v293_v19 = vld [vmem:[%s461_s4] ss:$0 sm:$0xff]  ;;  %s374_s4 = smov [#allocation3]  }
   0xd   :  { %v177_v26 = vld [vmem:[%s462_s5] sm:$0x1]  ;;  %v186_v29 = vsub.s32 0, %v185_v28  ;;  %s282_s16 = sshll.u32 %s374_s4, 4  ;;  %s283_s16 = int_to_ptr.vmem [resolvable:$true] %s282_s16 }
   0xe   :  { %321 = vmatpush3.bf16.msra.mxu1 %v341_v7  ;;  %s347_s5 = scalar_lea.vmem %s283_s16, 16  ;;  %s351_s17 = scalar_lea.vmem %s283_s16, 32 }
   0xf   :  { %322 = vmatprep.subr.bf16.mxu1 %v371_v2  ;;  %p348_p0 = scmp.ne.s32.totalorder %s283_s16, %s347_s5  ;;  %p352_p1 = scmp.lt.s32.totalorder %s283_s16, %s283_s16 }
  0x10   :  { %p353_p2 = scmp.lt.s32.totalorder %s351_s17, %s347_s5 }
  0x12   :  { %323 = vmatpush3.bf16.msra.mxu1 %v342_v8  ;;  %p354_p3 = por %p353_p2, %p352_p1 }
  0x14   :  { %p355_p4 = pnand %p354_p3, %p348_p0 }
  0x8b   :  { %v182_v30 = vpop.permute.xlu0 %181 }
  0x8c   :  { %v187_v31 = vrot.slane %v182_v30, %v186_v29 }
  0xdb   :  { %v85_v10 = vpop.f32.mrb[0].mxu0 }
  0xdc   :  { %v86_v11 = vadd.f32 %v290_v9, %v85_v10  ;;  %v314_v12 = vpop.f32.mrb[1].mxu0 }
  0xdd   :  { %v88_v13 = vpop.f32.mrb[2].mxu0 }
  0xde   :  { %v91_v14 = vmax.f32 %v86_v11, 0.0  ;;  %v315_v15 = vpop.f32.mrb[3].mxu0 }
  0xe0   :  { %v92_v16 = vpack.c.bf16 %v91_v14, %v91_v14 }
  0xe2   :  { %325 = vmatmul.mubr.msk.bf16.vlgmr.msra.gmra.mrb[0].mxu1 %vm132_vm2, %v92_v16 }
 0x1b5   :  { %v170_v20 = vpop.f32.mrb[0].mxu1 }
 0x1b6   :  { %v171_v21 = vadd.f32 %v293_v19, %v170_v20  ;;  %v326_v22 = vpop.f32.mrb[1].mxu1 }
 0x1b7   :  { %v173_v23 = vpop.f32.mrb[2].mxu1 }
 0x1b8   :  { %v176_v24 = vmax.f32 %v171_v21, 0.0  ;;  %v327_v25 = vpop.f32.mrb[3].mxu1 }
 0x1ba   :  { %329 = vmatpush3.xpose.msk.msra.mxu0 %vm188_vm3, %v176_v24 }
 0x1bd   :  { %331 = vmatmul.mubr.msk.f32.vlgmr.msra.gmra.mrb[4].mxu0 %vm188_vm3, %v177_v26 }
 0x290   :  { %v261_v32 = vpop.f32.mrb[4].mxu0 }
 0x291   :  { %v262_v33 = vadd.f32 %v261_v32, %v187_v31  ;;  %v332_v34 = vpop.f32.mrb[5].mxu0 }
 0x293   :  { %v265_v35 = vand.u32 2147483647, %v262_v33  ;;  %vm269_vm4 = vcmp.ge.f32.partialorder %v262_v33, 0.0 }
 0x295   :  { %v266_v36 = vsub.f32 0.0, %v265_v35 }
 0x297   :  { %v267_v37 = vmul.f32 1.442695, %v266_v36 }
 0x299   :  { %343 = vpow2.f32 %v267_v37 }
 0x2a3   :  { %v344_v38 = vpop.eup %343 }
 0x2a4   :  { %v271_v39 = vadd.f32 1.0, %v344_v38  ;;  %v270_v41 = vsel %vm269_vm4, 1.0, %v344_v38 }
 0x2a6   :  { %345 = vrcp.f32 %v271_v39 }
 0x2b0   :  { %v346_v40 = vpop.eup %345 }
 0x2b1   :  { %v273_v42 = vmul.f32 %v346_v40, %v270_v41 }
 0x2b3   :  { %275 = vst.msk [vmem:[#allocation3] sm:$0x1] %vm274_vm5, %v273_v42 }
 0x2b4   :  { %358 = shalt.err (!%p355_p4)
}
 0x2b5   :  { %s359_s20 = scalar_lea.hbm %s464_s7, 16 }
 0x2b6   :  { %p360_p5 = scmp.ne.s32.totalorder %s464_s7, %s359_s20  ;;  %p363_p6 = scmp.lt.u32.totalorder %s359_s20, %s464_s7 }
 0x2b8   :  { %p365_p7 = pnand %p363_p6, %p360_p5 }
 0x2ba   :  { %368 = shalt.err (!%p365_p7)
}
 0x2bb   :  { %285 = dma.vmem_to_hbm [thread:$0]  %s283_s16, 16, %s464_s7, [#allocation4]  }
 0x2bc   :  { %369 = dma.done.wait [#allocation4], 16  }
 0x2bd   :  { %370 = vsyncadd [#allocation4], 4294967280 }
 0x2be   :  { %289 = vsyncpa [#allocation4], 1 }

</bundles_post_ra>
